<compile_context>
chip_gen: v5e
topology: v5e:2x2
jax: 0.10.0
libtpu: 0.0.40
codegen_flags: <defaults>
</compile_context>

<pallas_src>
import functools

import jax
import jax.numpy as jnp
from jax.experimental import pallas as pl
from jax.experimental.pallas import tpu as pltpu


# -----------------------------------------------------------------------------
# Single fused kernel: stacked-LSTM recurrence + regression head.
# Gate column order inside the kernel is [i, f, o, g].
# -----------------------------------------------------------------------------
def _forecaster_kernel(*refs, T, B, L, H):
    f32 = jnp.float32
    n_deep = 2 * (L - 1)
    x_ref, wih0_ref, whh0_ref = refs[0], refs[1], refs[2]
    deep_refs = refs[3:3 + n_deep]                      # [wih_1, whh_1, wih_2, whh_2, ...]
    b_ref, w1_ref, b1_ref, w2_ref, b2_ref = refs[3 + n_deep:8 + n_deep]
    o_ref = refs[8 + n_deep]                            # (T, n_out) output
    xp_ref = refs[9 + n_deep]                           # (T*B, 4H) VMEM scratch
    last_ref = refs[10 + n_deep]                        # (T, H)    VMEM scratch

    # ---------------- hoisted, loop-invariant work -----------------------
    b_all = b_ref[...]                                  # (L, 4H)

    # Layer-0 input projection for all T*B rows in ONE MXU call, bias folded
    # in; parked in a ref-backed VMEM slab and re-read (8,128)-aligned slices
    # per step instead of keeping a huge traced value live across the unroll.
    xp_ref[...] = (jnp.dot(x_ref[...], wih0_ref[...],
                           preferred_element_type=f32)
                   + jnp.broadcast_to(b_all[0], (T * B, 4 * H)))

    whh0 = whh0_ref[...]                                # (H, 4H), loaded once
    wih_deep = [deep_refs[2 * k][...] for k in range(L - 1)]      # (H, 4H)
    whh_deep = [deep_refs[2 * k + 1][...] for k in range(L - 1)]  # (H, 4H)
    b_deep = [jnp.broadcast_to(b_all[l], (B, 4 * H)) for l in range(1, L)]

    # Lane mask: lanes [0, 3H) -> sigmoid (i, f, o), lanes [3H, 4H) -> tanh (g).
    # Both transcendentals operate on the full 4H-lane vreg; no masked
    # sub-vreg (96/32-lane) transcendental slices.
    lane = jax.lax.broadcasted_iota(jnp.int32, (B, 4 * H), 1)
    is_g = lane >= 3 * H

    h = [jnp.zeros((B, H), f32) for _ in range(L)]
    c = [jnp.zeros((B, H), f32) for _ in range(L)]

    def cell(gates, c_prev):
        act = jnp.where(is_g, jnp.tanh(gates), jax.nn.sigmoid(gates))
        i_g = act[:, 0 * H:1 * H]
        f_g = act[:, 1 * H:2 * H]
        o_g = act[:, 2 * H:3 * H]
        g_g = act[:, 3 * H:4 * H]
        c_new = f_g * c_prev + i_g * g_g
        h_new = o_g * jnp.tanh(c_new)
        return h_new, c_new

    # Rows of the flattened (T*B, H) top-layer output that the module's
    # `.view(seq_len, len(x), H)[-1]` actually reads: the last T rows.
    need_lo = T * B - T

    # T is small and static here -> fully unrolled.
    # TODO(synk): for large T use lax.fori_loop(unroll=2-4) + dynamic slices.
    for t in range(T):
        # Layer 0: recurrent term only (input proj + bias precomputed above).
        gates0 = (xp_ref[pl.ds(t * B, B), :]
                  + jnp.dot(h[0], whh0, preferred_element_type=f32))
        h[0], c[0] = cell(gates0, c[0])
        for l in range(1, L):
            # Two MXU pushes — no per-step lane concat of [h_{l-1} | h_l].
            gates = (jnp.dot(h[l - 1], wih_deep[l - 1],
                             preferred_element_type=f32)
                     + jnp.dot(h[l], whh_deep[l - 1],
                               preferred_element_type=f32)
                     + b_deep[l - 1])
            h[l], c[l] = cell(gates, c[l])
        # Store only the flattened rows the head consumes, straight into the
        # VMEM scratch (no Python-list accumulation / final concat).
        lo = t * B
        if lo + B > need_lo:
            start_b = max(lo, need_lo) - lo
            dst = lo + start_b - need_lo
            last_ref[pl.ds(dst, B - start_b), :] = h[L - 1][start_b:, :]

    # Regression head: Linear -> Tanh -> Linear, fused (no HBM intermediate).
    hid = jnp.tanh(jnp.dot(last_ref[...], w1_ref[...],
                           preferred_element_type=f32) + b1_ref[...])
    o_ref[...] = (jnp.dot(hid, w2_ref[...],
                          preferred_element_type=f32) + b2_ref[...])


# -----------------------------------------------------------------------------
# Wrapper: one pallas_call, everything resident in VMEM as full blocks.
# -----------------------------------------------------------------------------
def load_forecaster_forward(x, packed, *, seq_len, n_hidden):
    T = x.shape[0]               # len(x): the LSTM time axis in this module
    B = seq_len                  # the module (mis)uses seq_len as the LSTM batch
    x_flat = x.reshape(T * B, -1)            # == x.view(len(x), seq_len, -1), flattened
    F = x_flat.shape[1]
    H = n_hidden
    L = packed["b"].shape[0]
    n_out = packed["w2"].shape[1]

    deep_args = []
    for wih, whh in zip(packed["w_ih_deep"], packed["w_hh_deep"]):
        deep_args += [wih, whh]                         # empty when L == 1

    flops = int(2 * T * B * F * 4 * H                   # hoisted layer-0 input proj
                + 2 * T * B * H * 4 * H                 # layer-0 recurrent matmuls
                + 4 * T * (L - 1) * B * H * 4 * H       # deeper layers: 2 dots/step
                + 2 * T * H * H + 2 * T * H * n_out)    # regression head
    transcendentals = int(T * L * B * 9 * H + T * H)
    bytes_accessed = int(4 * (x_flat.size
                              + packed["w_ih0"].size + packed["w_hh0"].size
                              + sum(w.size for w in packed["w_ih_deep"])
                              + sum(w.size for w in packed["w_hh_deep"])
                              + packed["b"].size + packed["w1"].size
                              + packed["b1"].size + packed["w2"].size
                              + packed["b2"].size + T * n_out))

    kernel = functools.partial(_forecaster_kernel, T=T, B=B, L=L, H=H)
    return pl.pallas_call(
        kernel,
        out_shape=jax.ShapeDtypeStruct((T, n_out), jnp.float32),
        scratch_shapes=[pltpu.VMEM((T * B, 4 * H), jnp.float32),   # x_proj slab
                        pltpu.VMEM((T, H), jnp.float32)],          # head input rows
        cost_estimate=pl.CostEstimate(flops=flops,
                                      transcendentals=transcendentals,
                                      bytes_accessed=bytes_accessed),
    )(x_flat, packed["w_ih0"], packed["w_hh0"], *deep_args,
      packed["b"], packed["w1"], packed["b1"], packed["w2"], packed["b2"])


# -----------------------------------------------------------------------------
# Parameter init (canonical PyTorch-style layout, gate order [i, f, g, o]).
# -----------------------------------------------------------------------------
def init_params(key, n_features, n_hidden, n_layers, out_features):
    bound = 1.0 / float(n_hidden) ** 0.5
    keys = iter(jax.random.split(key, 6 * n_layers + 8))

    def u(shape):
        return jax.random.uniform(next(keys), shape, jnp.float32, -bound, bound)

    w_ih, w_hh, bias = [], [], []
    for l in range(n_layers):
        in_dim = n_features if l == 0 else n_hidden
        w_ih.append(u((in_dim, 4 * n_hidden)))
        w_hh.append(u((n_hidden, 4 * n_hidden)))
        bias.append(u((1, 4 * n_hidden)) + u((1, 4 * n_hidden)))   # b_ih + b_hh
    return dict(w_ih=w_ih, w_hh=w_hh, b=bias,
                w1=u((n_hidden, n_hidden)), b1=u((1, n_hidden)),
                w2=u((n_hidden, out_features)), b2=u((1, out_features)))


# -----------------------------------------------------------------------------
# Host-side packing: reorder gate columns to [i, f, o, g]; per-layer weights
# stay separate (two dots per deeper layer — no concat inside the kernel).
# -----------------------------------------------------------------------------
def _reorder_gates(w, H):
    # canonical [i, f, g, o] columns -> kernel order [i, f, o, g]
    return jnp.concatenate([w[..., :2 * H], w[..., 3 * H:], w[..., 2 * H:3 * H]],
                           axis=-1)


def pack_params(params, n_hidden):
    H = n_hidden
    L = len(params["w_ih"])
    return dict(
        w_ih0=_reorder_gates(params["w_ih"][0], H),                   # (F, 4H)
        w_hh0=_reorder_gates(params["w_hh"][0], H),                   # (H, 4H)
        w_ih_deep=[_reorder_gates(params["w_ih"][l], H) for l in range(1, L)],
        w_hh_deep=[_reorder_gates(params["w_hh"][l], H) for l in range(1, L)],
        b=jnp.concatenate([_reorder_gates(params["b"][l], H)
                           for l in range(L)], axis=0),               # (L, 4H)
        w1=params["w1"], b1=params["b1"],
        w2=params["w2"], b2=params["b2"])


# -----------------------------------------------------------------------------
# Pure-JAX reference (mirrors PyTorch nn.LSTM math) for a correctness check.
# -----------------------------------------------------------------------------
def reference_forward(x, params, *, seq_len, n_hidden, n_layers):
    T = x.shape[0]
    xv = x.reshape(T, seq_len, -1)
    B, H = seq_len, n_hidden
    h = [jnp.zeros((B, H), jnp.float32) for _ in range(n_layers)]
    c = [jnp.zeros((B, H), jnp.float32) for _ in range(n_layers)]
    outs = []
    for t in range(T):
        inp = xv[t]
        for l in range(n_layers):
            g = inp @ params["w_ih"][l] + h[l] @ params["w_hh"][l] + params["b"][l]
            i_g = jax.nn.sigmoid(g[:, 0 * H:1 * H])
            f_g = jax.nn.sigmoid(g[:, 1 * H:2 * H])
            g_g = jnp.tanh(g[:, 2 * H:3 * H])
            o_g = jax.nn.sigmoid(g[:, 3 * H:4 * H])
            c[l] = f_g * c[l] + i_g * g_g
            h[l] = o_g * jnp.tanh(c[l])
            inp = h[l]
        outs.append(inp)
    lstm_out = jnp.stack(outs)                              # (T, B, H)
    last = lstm_out.reshape(T * B, H)[-T:]                  # the module's view() quirk
    hid = jnp.tanh(last @ params["w1"] + params["b1"])
    return hid @ params["w2"] + params["b2"]


if __name__ == "__main__":
    n_features, n_hidden, seq_len, n_layers, out_features = 4, 32, 8, 2, 1
    batch = 2                                               # == len(x)

    key = jax.random.PRNGKey(0)
    k_x, k_p = jax.random.split(key)
    x = jax.random.normal(k_x, (batch, seq_len, n_features), jnp.float32)
    params = init_params(k_p, n_features, n_hidden, n_layers, out_features)
    packed = pack_params(params, n_hidden)

    y = load_forecaster_forward(x, packed, seq_len=seq_len, n_hidden=n_hidden)
    y = jax.block_until_ready(y)

    y_ref = reference_forward(x, params, seq_len=seq_len,
                              n_hidden=n_hidden, n_layers=n_layers)
    assert y.shape == (batch, out_features), y.shape
    assert jnp.allclose(y, y_ref, atol=1e-4, rtol=1e-4), (y, y_ref)
    print("KERNEL_OK")
</pallas_src>

<mosaic_0001>
module attributes {stable_mosaic.version = 11 : i64} {
  func.func @_forecaster_kernel(%arg0: memref<16x4xf32, #tpu.memory_space<vmem>>, %arg1: memref<4x128xf32, #tpu.memory_space<vmem>>, %arg2: memref<32x128xf32, #tpu.memory_space<vmem>>, %arg3: memref<32x128xf32, #tpu.memory_space<vmem>>, %arg4: memref<32x128xf32, #tpu.memory_space<vmem>>, %arg5: memref<2x128xf32, #tpu.memory_space<vmem>>, %arg6: memref<32x32xf32, #tpu.memory_space<vmem>>, %arg7: memref<1x32xf32, #tpu.memory_space<vmem>>, %arg8: memref<32x1xf32, #tpu.memory_space<vmem>>, %arg9: memref<1x1xf32, #tpu.memory_space<vmem>>, %arg10: memref<2x1xf32, #tpu.memory_space<vmem>>, %arg11: memref<16x128xf32, #tpu.memory_space<vmem>>, %arg12: memref<2x32xf32, #tpu.memory_space<vmem>>) attributes {dimension_semantics = [], scalar_prefetch = 0 : i64, scratch_operands = 2 : i64, tpu.core_type = #tpu.core_type<tc>} {
    %c0 = arith.constant 0 : index
    %c0_0 = arith.constant 0 : index
    %0 = vector.load %arg5[%c0, %c0_0] : memref<2x128xf32, #tpu.memory_space<vmem>>, vector<2x128xf32>
    %c0_1 = arith.constant 0 : index
    %c0_2 = arith.constant 0 : index
    %1 = vector.load %arg0[%c0_1, %c0_2] : memref<16x4xf32, #tpu.memory_space<vmem>>, vector<16x4xf32>
    %c0_3 = arith.constant 0 : index
    %c0_4 = arith.constant 0 : index
    %2 = vector.load %arg1[%c0_3, %c0_4] : memref<4x128xf32, #tpu.memory_space<vmem>>, vector<4x128xf32>
    %cst = arith.constant dense<0.000000e+00> : vector<16x128xf32>
    %3 = tpu.matmul %1, %2, %cst {dimension_numbers = #tpu.dot_dimension_numbers<[1], [0], [0], [1], [0, 0, 1, 1], [], []>} : vector<16x4xf32>, vector<4x128xf32>, vector<16x128xf32> -> vector<16x128xf32>
    %4 = vector.extract_strided_slice %0 {offsets = [0, 0], sizes = [1, 128], strides = [1, 1]} : vector<2x128xf32> to vector<1x128xf32>
    %5 = vector.shape_cast %4 : vector<1x128xf32> to vector<128xf32>
    %6 = vector.shape_cast %5 : vector<128xf32> to vector<1x128xf32>
    %7 = vector.broadcast %6 : vector<1x128xf32> to vector<16x128xf32>
    %8 = arith.addf %3, %7 : vector<16x128xf32>
    %c0_5 = arith.constant 0 : index
    %c0_6 = arith.constant 0 : index
    %9 = vector.load %arg11[%c0_5, %c0_6] : memref<16x128xf32, #tpu.memory_space<vmem>>, vector<16x128xf32>
    tpu.vector_store %arg11[%c0_5, %c0_6], %8 {strides = array<i32>} : memref<16x128xf32, #tpu.memory_space<vmem>>, vector<16x128xf32>,
    %c0_7 = arith.constant 0 : index
    %c0_8 = arith.constant 0 : index
    %10 = vector.load %arg2[%c0_7, %c0_8] : memref<32x128xf32, #tpu.memory_space<vmem>>, vector<32x128xf32>
    %c0_9 = arith.constant 0 : index
    %c0_10 = arith.constant 0 : index
    %11 = vector.load %arg3[%c0_9, %c0_10] : memref<32x128xf32, #tpu.memory_space<vmem>>, vector<32x128xf32>
    %c0_11 = arith.constant 0 : index
    %c0_12 = arith.constant 0 : index
    %12 = vector.load %arg4[%c0_11, %c0_12] : memref<32x128xf32, #tpu.memory_space<vmem>>, vector<32x128xf32>
    %13 = vector.extract_strided_slice %0 {offsets = [1, 0], sizes = [1, 128], strides = [1, 1]} : vector<2x128xf32> to vector<1x128xf32>
    %14 = vector.shape_cast %13 : vector<1x128xf32> to vector<128xf32>
    %15 = vector.shape_cast %14 : vector<128xf32> to vector<1x128xf32>
    %16 = vector.broadcast %15 : vector<1x128xf32> to vector<8x128xf32>
    %17 = tpu.iota {dimensions = array<i32: 1>} : vector<8x128xi32>
    %c96_i32 = arith.constant 96 : i32
    %18 = vector.broadcast %c96_i32 : i32 to vector<8x128xi32>
    %19 = arith.cmpi sge, %17, %18 : vector<8x128xi32>
    %cst_13 = arith.constant 0.000000e+00 : f32
    %20 = vector.broadcast %cst_13 : f32 to vector<8x32xf32>
    %cst_14 = arith.constant 0.000000e+00 : f32
    %21 = vector.broadcast %cst_14 : f32 to vector<8x32xf32>
    %cst_15 = arith.constant 0.000000e+00 : f32
    %22 = vector.broadcast %cst_15 : f32 to vector<8x32xf32>
    %cst_16 = arith.constant 0.000000e+00 : f32
    %23 = vector.broadcast %cst_16 : f32 to vector<8x32xf32>
    %c0_17 = arith.constant 0 : index
    %c0_18 = arith.constant 0 : index
    %24 = vector.load %arg11[%c0_17, %c0_18] : memref<16x128xf32, #tpu.memory_space<vmem>>, vector<8x128xf32>
    %cst_19 = arith.constant dense<0.000000e+00> : vector<8x128xf32>
    %25 = tpu.matmul %20, %10, %cst_19 {dimension_numbers = #tpu.dot_dimension_numbers<[1], [0], [0], [1], [0, 0, 1, 1], [], []>} : vector<8x32xf32>, vector<32x128xf32>, vector<8x128xf32> -> vector<8x128xf32>
    %26 = arith.addf %24, %25 : vector<8x128xf32>
    %27 = math.tanh %26 : vector<8x128xf32>
    %28 = arith.negf %26 : vector<8x128xf32>
    %29 = math.exp %28 : vector<8x128xf32>
    %cst_20 = arith.constant 1.000000e+00 : f32
    %30 = vector.broadcast %cst_20 : f32 to vector<8x128xf32>
    %31 = arith.addf %30, %29 : vector<8x128xf32>
    %32 = arith.divf %30, %31 : vector<8x128xf32>
    %33 = arith.select %19, %27, %32 : vector<8x128xi1>, vector<8x128xf32>
    %34 = vector.extract_strided_slice %33 {offsets = [0, 0], sizes = [8, 32], strides = [1, 1]} : vector<8x128xf32> to vector<8x32xf32>
    %35 = vector.extract_strided_slice %33 {offsets = [0, 32], sizes = [8, 32], strides = [1, 1]} : vector<8x128xf32> to vector<8x32xf32>
    %36 = vector.extract_strided_slice %33 {offsets = [0, 64], sizes = [8, 32], strides = [1, 1]} : vector<8x128xf32> to vector<8x32xf32>
    %37 = vector.extract_strided_slice %33 {offsets = [0, 96], sizes = [8, 32], strides = [1, 1]} : vector<8x128xf32> to vector<8x32xf32>
    %38 = arith.mulf %35, %22 : vector<8x32xf32>
    %39 = arith.mulf %34, %37 : vector<8x32xf32>
    %40 = arith.addf %38, %39 : vector<8x32xf32>
    %41 = math.tanh %40 : vector<8x32xf32>
    %42 = arith.mulf %36, %41 : vector<8x32xf32>
    %cst_21 = arith.constant dense<0.000000e+00> : vector<8x128xf32>
    %43 = tpu.matmul %42, %11, %cst_21 {dimension_numbers = #tpu.dot_dimension_numbers<[1], [0], [0], [1], [0, 0, 1, 1], [], []>} : vector<8x32xf32>, vector<32x128xf32>, vector<8x128xf32> -> vector<8x128xf32>
    %cst_22 = arith.constant dense<0.000000e+00> : vector<8x128xf32>
    %44 = tpu.matmul %21, %12, %cst_22 {dimension_numbers = #tpu.dot_dimension_numbers<[1], [0], [0], [1], [0, 0, 1, 1], [], []>} : vector<8x32xf32>, vector<32x128xf32>, vector<8x128xf32> -> vector<8x128xf32>
    %45 = arith.addf %43, %44 : vector<8x128xf32>
    %46 = arith.addf %45, %16 : vector<8x128xf32>
    %47 = math.tanh %46 : vector<8x128xf32>
    %48 = arith.negf %46 : vector<8x128xf32>
    %49 = math.exp %48 : vector<8x128xf32>
    %cst_23 = arith.constant 1.000000e+00 : f32
    %50 = vector.broadcast %cst_23 : f32 to vector<8x128xf32>
    %51 = arith.addf %50, %49 : vector<8x128xf32>
    %52 = arith.divf %50, %51 : vector<8x128xf32>
    %53 = arith.select %19, %47, %52 : vector<8x128xi1>, vector<8x128xf32>
    %54 = vector.extract_strided_slice %53 {offsets = [0, 0], sizes = [8, 32], strides = [1, 1]} : vector<8x128xf32> to vector<8x32xf32>
    %55 = vector.extract_strided_slice %53 {offsets = [0, 32], sizes = [8, 32], strides = [1, 1]} : vector<8x128xf32> to vector<8x32xf32>
    %56 = vector.extract_strided_slice %53 {offsets = [0, 64], sizes = [8, 32], strides = [1, 1]} : vector<8x128xf32> to vector<8x32xf32>
    %57 = vector.extract_strided_slice %53 {offsets = [0, 96], sizes = [8, 32], strides = [1, 1]} : vector<8x128xf32> to vector<8x32xf32>
    %58 = arith.mulf %55, %23 : vector<8x32xf32>
    %59 = arith.mulf %54, %57 : vector<8x32xf32>
    %60 = arith.addf %58, %59 : vector<8x32xf32>
    %61 = math.tanh %60 : vector<8x32xf32>
    %62 = arith.mulf %56, %61 : vector<8x32xf32>
    %c8 = arith.constant 8 : index
    %c0_24 = arith.constant 0 : index
    %63 = vector.load %arg11[%c8, %c0_24] : memref<16x128xf32, #tpu.memory_space<vmem>>, vector<8x128xf32>
    %cst_25 = arith.constant dense<0.000000e+00> : vector<8x128xf32>
    %64 = tpu.matmul %42, %10, %cst_25 {dimension_numbers = #tpu.dot_dimension_numbers<[1], [0], [0], [1], [0, 0, 1, 1], [], []>} : vector<8x32xf32>, vector<32x128xf32>, vector<8x128xf32> -> vector<8x128xf32>
    %65 = arith.addf %63, %64 : vector<8x128xf32>
    %66 = math.tanh %65 : vector<8x128xf32>
    %67 = arith.negf %65 : vector<8x128xf32>
    %68 = math.exp %67 : vector<8x128xf32>
    %cst_26 = arith.constant 1.000000e+00 : f32
    %69 = vector.broadcast %cst_26 : f32 to vector<8x128xf32>
    %70 = arith.addf %69, %68 : vector<8x128xf32>
    %71 = arith.divf %69, %70 : vector<8x128xf32>
    %72 = arith.select %19, %66, %71 : vector<8x128xi1>, vector<8x128xf32>
    %73 = vector.extract_strided_slice %72 {offsets = [0, 0], sizes = [8, 32], strides = [1, 1]} : vector<8x128xf32> to vector<8x32xf32>
    %74 = vector.extract_strided_slice %72 {offsets = [0, 32], sizes = [8, 32], strides = [1, 1]} : vector<8x128xf32> to vector<8x32xf32>
    %75 = vector.extract_strided_slice %72 {offsets = [0, 64], sizes = [8, 32], strides = [1, 1]} : vector<8x128xf32> to vector<8x32xf32>
    %76 = vector.extract_strided_slice %72 {offsets = [0, 96], sizes = [8, 32], strides = [1, 1]} : vector<8x128xf32> to vector<8x32xf32>
    %77 = arith.mulf %74, %40 : vector<8x32xf32>
    %78 = arith.mulf %73, %76 : vector<8x32xf32>
    %79 = arith.addf %77, %78 : vector<8x32xf32>
    %80 = math.tanh %79 : vector<8x32xf32>
    %81 = arith.mulf %75, %80 : vector<8x32xf32>
    %cst_27 = arith.constant dense<0.000000e+00> : vector<8x128xf32>
    %82 = tpu.matmul %81, %11, %cst_27 {dimension_numbers = #tpu.dot_dimension_numbers<[1], [0], [0], [1], [0, 0, 1, 1], [], []>} : vector<8x32xf32>, vector<32x128xf32>, vector<8x128xf32> -> vector<8x128xf32>
    %cst_28 = arith.constant dense<0.000000e+00> : vector<8x128xf32>
    %83 = tpu.matmul %62, %12, %cst_28 {dimension_numbers = #tpu.dot_dimension_numbers<[1], [0], [0], [1], [0, 0, 1, 1], [], []>} : vector<8x32xf32>, vector<32x128xf32>, vector<8x128xf32> -> vector<8x128xf32>
    %84 = arith.addf %82, %83 : vector<8x128xf32>
    %85 = arith.addf %84, %16 : vector<8x128xf32>
    %86 = math.tanh %85 : vector<8x128xf32>
    %87 = arith.negf %85 : vector<8x128xf32>
    %88 = math.exp %87 : vector<8x128xf32>
    %cst_29 = arith.constant 1.000000e+00 : f32
    %89 = vector.broadcast %cst_29 : f32 to vector<8x128xf32>
    %90 = arith.addf %89, %88 : vector<8x128xf32>
    %91 = arith.divf %89, %90 : vector<8x128xf32>
    %92 = arith.select %19, %86, %91 : vector<8x128xi1>, vector<8x128xf32>
    %93 = vector.extract_strided_slice %92 {offsets = [0, 0], sizes = [8, 32], strides = [1, 1]} : vector<8x128xf32> to vector<8x32xf32>
    %94 = vector.extract_strided_slice %92 {offsets = [0, 32], sizes = [8, 32], strides = [1, 1]} : vector<8x128xf32> to vector<8x32xf32>
    %95 = vector.extract_strided_slice %92 {offsets = [0, 64], sizes = [8, 32], strides = [1, 1]} : vector<8x128xf32> to vector<8x32xf32>
    %96 = vector.extract_strided_slice %92 {offsets = [0, 96], sizes = [8, 32], strides = [1, 1]} : vector<8x128xf32> to vector<8x32xf32>
    %97 = arith.mulf %94, %60 : vector<8x32xf32>
    %98 = arith.mulf %93, %96 : vector<8x32xf32>
    %99 = arith.addf %97, %98 : vector<8x32xf32>
    %100 = math.tanh %99 : vector<8x32xf32>
    %101 = arith.mulf %95, %100 : vector<8x32xf32>
    %102 = vector.extract_strided_slice %101 {offsets = [6, 0], sizes = [2, 32], strides = [1, 1]} : vector<8x32xf32> to vector<2x32xf32>
    %c0_30 = arith.constant 0 : index
    %c0_31 = arith.constant 0 : index
    %103 = vector.load %arg12[%c0_30, %c0_31] : memref<2x32xf32, #tpu.memory_space<vmem>>, vector<2x32xf32>
    tpu.vector_store %arg12[%c0_30, %c0_31], %102 {strides = array<i32>} : memref<2x32xf32, #tpu.memory_space<vmem>>, vector<2x32xf32>,
    %c0_32 = arith.constant 0 : index
    %c0_33 = arith.constant 0 : index
    %104 = vector.load %arg12[%c0_32, %c0_33] : memref<2x32xf32, #tpu.memory_space<vmem>>, vector<2x32xf32>
    %c0_34 = arith.constant 0 : index
    %c0_35 = arith.constant 0 : index
    %105 = vector.load %arg6[%c0_34, %c0_35] : memref<32x32xf32, #tpu.memory_space<vmem>>, vector<32x32xf32>
    %cst_36 = arith.constant dense<0.000000e+00> : vector<2x32xf32>
    %106 = tpu.matmul %104, %105, %cst_36 {dimension_numbers = #tpu.dot_dimension_numbers<[1], [0], [0], [1], [0, 0, 1, 1], [], []>} : vector<2x32xf32>, vector<32x32xf32>, vector<2x32xf32> -> vector<2x32xf32>
    %c0_37 = arith.constant 0 : index
    %c0_38 = arith.constant 0 : index
    %107 = vector.load %arg7[%c0_37, %c0_38] : memref<1x32xf32, #tpu.memory_space<vmem>>, vector<1x32xf32>
    %108 = vector.broadcast %107 : vector<1x32xf32> to vector<2x32xf32>
    %109 = arith.addf %106, %108 : vector<2x32xf32>
    %110 = math.tanh %109 : vector<2x32xf32>
    %c0_39 = arith.constant 0 : index
    %c0_40 = arith.constant 0 : index
    %111 = vector.load %arg8[%c0_39, %c0_40] : memref<32x1xf32, #tpu.memory_space<vmem>>, vector<32x1xf32>
    %cst_41 = arith.constant dense<0.000000e+00> : vector<2x1xf32>
    %112 = tpu.matmul %110, %111, %cst_41 {dimension_numbers = #tpu.dot_dimension_numbers<[1], [0], [0], [1], [0, 0, 1, 1], [], []>} : vector<2x32xf32>, vector<32x1xf32>, vector<2x1xf32> -> vector<2x1xf32>
    %c0_42 = arith.constant 0 : index
    %c0_43 = arith.constant 0 : index
    %113 = vector.load %arg9[%c0_42, %c0_43] : memref<1x1xf32, #tpu.memory_space<vmem>>, vector<1x1xf32>
    %114 = vector.broadcast %113 : vector<1x1xf32> to vector<2x1xf32>
    %115 = arith.addf %112, %114 : vector<2x1xf32>
    %c0_44 = arith.constant 0 : index
    %c0_45 = arith.constant 0 : index
    %116 = vector.load %arg10[%c0_44, %c0_45] : memref<2x1xf32, #tpu.memory_space<vmem>>, vector<2x1xf32>
    tpu.vector_store %arg10[%c0_44, %c0_45], %115 {strides = array<i32>} : memref<2x1xf32, #tpu.memory_space<vmem>>, vector<2x1xf32>,
    return
  }
}

</mosaic_0001>

<bundles_post_ra>
// kernel: tpu_custom_call.1
= control target key start
LH: loop header
LB: loop body
LE: loop exit
PB: predicated region body
PF: predicated region fallthrough
CT: control target
= control target key end

     0   :  { %s819_s0 = inlined_call_operand.vmem [shape: f32[16,4], index: 0, kind: input, shape index: {}]   ;;  %s820_s1 = inlined_call_operand.vmem [shape: f32[4,128], index: 1, kind: input, shape index: {}]   ;;  %s821_s2 = inlined_call_operand.vmem [shape: f32[32,128], index: 2, kind: input, shape index: {}]   ;;  %s822_s3 = inlined_call_operand.hbm [shape: f32[32,128], index: 3, kind: input, shape index: {}]   ;;  %s823_s4 = inlined_call_operand.hbm [shape: f32[32,128], index: 4, kind: input, shape index: {}]   ;;  %s824_s5 = inlined_call_operand.vmem [shape: f32[2,128], index: 5, kind: input, shape index: {}]   ;;  %s825_s6 = inlined_call_operand.hbm [shape: f32[32,32], index: 6, kind: input, shape index: {}]   ;;  %s826_s7 = inlined_call_operand.vmem [shape: f32[1,32], index: 7, kind: input, shape index: {}]   ;;  %s827_s8 = inlined_call_operand.vmem [shape: f32[32,1], index: 8, kind: input, shape index: {}]   ;;  %s828_s9 = inlined_call_operand.<no memory space> [shape: f32[1,1], index: 9, kind: input, shape index: {}]   ;;  %s829_s10 = inlined_call_operand.vmem [shape: f32[2,1], index: 10, kind: output, shape index: {}]  }
   0x1   :  { %v15_v0 = vstv %s828_s9 }
   0x2   :  { %16 = vst [vmem:[#allocation4] sm:$0x1] %v15_v0 }
   0x3   :  { %17 = vsyncpa [#allocation6], 0 }
   0x4   :  { %18 = vsyncpa [#allocation8], 0  ;;  %s42_s17 = sshll.u32 %s823_s4, 4  ;;  %s649_s18 = smov [#allocation7]   ;;  %s43_s17 = int_to_ptr.hbm [resolvable:$true] %s42_s17 }
   0x5   :  { %s44_s19 = sshll.u32 %s649_s18, 4  ;;  %s29_s22 = sshll.u32 %s822_s3, 4  ;;  %s45_s19 = int_to_ptr.vmem [resolvable:$true] %s44_s19  ;;  %s30_s22 = int_to_ptr.hbm [resolvable:$true] %s29_s22 }
   0x6   :  { %s650_s23 = smov 128   ;;  %s651_s24 = smov 8  }
   0x7   :  { %50 = dma.hbm_to_vmem [thread:$0]  %s43_s17, 512, %s45_s19, [#allocation8], %s650_s23, %s650_s23, %s651_s24  }
   0x8   :  { %s652_s9 = smov [#allocation5]   ;;  %s57_s28 = sshll.u32 %s825_s6, 4  ;;  %s58_s28 = int_to_ptr.hbm [resolvable:$true] %s57_s28 }
   0x9   :  { %s31_s25 = sshll.u32 %s652_s9, 4  ;;  %s653_s4 = smov [#allocation9]   ;;  %s32_s25 = int_to_ptr.vmem [resolvable:$true] %s31_s25 }
   0xa   :  { %37 = dma.hbm_to_vmem [thread:$0]  %s30_s22, 512, %s32_s25, [#allocation6], %s650_s23, %s650_s23, %s651_s24  }
   0xb   :  { %s59_s29 = sshll.u32 %s653_s4, 4  ;;  %s60_s29 = int_to_ptr.vmem [resolvable:$true] %s59_s29 }
   0xc   :  { %65 = dma.hbm_to_vmem [thread:$0]  %s58_s28, 512, %s60_s29, [#allocation8], %s650_s23, %s650_s23, %s651_s24  }
   0xd   :  { %645 = dma.done.wait [#allocation6], 512  }
   0xe   :  { %646 = vsyncadd [#allocation6], 4294966784 }
   0xf   :  { %647 = dma.done.wait [#allocation8], 1024  }
  0x10   :  { %648 = vsyncadd [#allocation8], 4294966272  ;;  %vm96_vm0 = vcmask 1043456   ;;  %vm89_vm1 = vcmask 31744   ;;  %v128_v1 = vld [vmem:[%s821_s2 + $0x18] sm:$0xff]  ;;  %v127_v2 = vld [vmem:[%s821_s2 + $0x10] sm:$0xff]  ;;  %v138_v18 = vlaneseq }
  0x11   :  { %v87_v3 = vld [vmem:[%s820_s1] sm:$0xf]  ;;  %158 = vmatpush.msra.mxu1 %v128_v1  ;;  %v126_v5 = vld [vmem:[%s821_s2 + $0x8] sm:$0xff]  ;;  %v654_v7 = vmov 0.0   ;;  %v135_v39 = vld [vmem:[#allocation7 + $0x10] sm:$0xff]  ;;  %vm142_vm7 = vcmask 261120  }
  0x12   :  { %516 = vmatpush.msk.msra.mxu0 %vm96_vm0, %v87_v3  ;;  %v85_v4 = vld [vmem:[%s819_s0] sm:$0xff]  ;;  %v752_v21 = vand.u32 127, %v138_v18  ;;  %v131_v40 = vld [vmem:[#allocation5 + $0x10] sm:$0xff]  ;;  %v134_v41 = vld [vmem:[#allocation7 + $0x8] sm:$0xff] }
  0x13   :  { %517 = vmatmul.msk.f32.vlgmr.msra.gmra.mxu0 %vm89_vm1, %v85_v4  ;;  %159 = vmatpush.msra.mxu1 %v127_v2  ;;  %v125_v6 = vld [vmem:[%s821_s2] sm:$0xff]  ;;  %s655_s2 = smov 32   ;;  %v130_v42 = vld [vmem:[#allocation5 + $0x8] sm:$0xff] }
  0x14   :  { %v747_v8 = vld [vmem:[%s824_s5] sm:$0x3]  ;;  %vm140_vm4 = vcmp.ge.s32.totalorder %v752_v21, 96  ;;  %v86_v43 = vld [vmem:[%s819_s0 + $0x8] sm:$0xff]  ;;  %s656_s0 = smov 64  }
  0x15   :  { %160 = vmatpush.msra.mxu1 %v126_v5  ;;  %v88_v9 = vperm.slane %v747_v8, 0  ;;  %v136_v37 = vld [vmem:[#allocation7 + $0x18] sm:$0xff]  ;;  %v133_v44 = vld [vmem:[#allocation7] sm:$0xff]  ;;  %v137_v55 = vperm.slane %v747_v8, 1 }
  0x16   :  { %v132_v38 = vld [vmem:[#allocation5 + $0x18] sm:$0xff]  ;;  %217 = vmatpush.msra.mxu2 %v136_v37  ;;  %v129_v45 = vld [vmem:[#allocation5] sm:$0xff] }
  0x17   :  { %161 = vmatpush.msra.mxu1 %v125_v6  ;;  %242 = vmatpush.msra.mxu3 %v132_v38 }
  0x18   :  { %162 = vmatmul.f32.vlgmr.msra.gmra.mxu1 %v654_v7  ;;  %218 = vmatpush.msra.mxu2 %v135_v39 }
  0x19   :  { %302 = vmatpush.msrb.mxu1 %v128_v1  ;;  %243 = vmatpush.msra.mxu3 %v131_v40 }
  0x1a   :  { %219 = vmatpush.msra.mxu2 %v134_v41 }
  0x1b   :  { %303 = vmatpush.msrb.mxu1 %v127_v2  ;;  %518 = vmatmul.msk.f32.gmra.mxu0 %vm89_vm1, %v86_v43 }
  0x1c   :  { %244 = vmatpush.msra.mxu3 %v130_v42  ;;  %220 = vmatpush.msra.mxu2 %v133_v44 }
  0x1d   :  { %304 = vmatpush.msrb.mxu1 %v126_v5  ;;  %221 = vmatmul.f32.vlgmr.msra.gmra.mxu2 %v654_v7 }
  0x1e   :  { %245 = vmatpush.msra.mxu3 %v129_v45  ;;  %366 = vmatpush.msrb.mxu2 %v136_v37 }
  0x1f   :  { %305 = vmatpush.msrb.mxu1 %v125_v6 }
  0x20   :  { %391 = vmatpush.msrb.mxu3 %v132_v38  ;;  %367 = vmatpush.msrb.mxu2 %v135_v39 }
  0x22   :  { %392 = vmatpush.msrb.mxu3 %v131_v40  ;;  %368 = vmatpush.msrb.mxu2 %v134_v41 }
  0x24   :  { %393 = vmatpush.msrb.mxu3 %v130_v42  ;;  %369 = vmatpush.msrb.mxu2 %v133_v44 }
  0x26   :  { %394 = vmatpush.msrb.mxu3 %v129_v45 }
  0x90   :  { %v117_v10 = vpop.f32.mrf.mxu0 }
  0x91   :  { %v118_v11 = vadd.f32 %v117_v10, %v88_v9 }
  0x95   :  { %v163_v12 = vpop.f32.mrf.mxu1 }
  0x96   :  { %v166_v13 = vadd.f32 %v163_v12, %v118_v11 }
  0x98   :  { %v519_v14 = vmul.f32 -1.442695, %v166_v13  ;;  %v120_v49 = vpop.f32.mrf.mxu0 }
  0x99   :  { %v121_v50 = vadd.f32 %v120_v49, %v88_v9 }
  0x9a   :  { %539 = vpow2.f32 %v519_v14 }
  0xa0   :  { %v540_v15 = vpop.eup %539  ;;  %v222_v54 = vpop.f32.mrf.mxu2 }
  0xa1   :  { %v171_v16 = vadd.f32 1.0, %v540_v15 }
  0xa3   :  { %541 = vrcp.f32 %v171_v16  ;;  %v183_v22 = vand.u32 2147483648, %v171_v16  ;;  %v181_v24 = vand.u32 2147483647, %v171_v16  ;;  %vm177_vm3 = vweird.f32 %v171_v16 }
  0xa4   :  { %543 = vtanh.f32 %v166_v13 }
  0xa5   :  { %v184_v26 = vor.u32 1.1754944e-38, %v183_v22  ;;  %vm182_vm6 = vcmp.eq.f32.partialorder %v181_v24, 8.507059e+37 }
  0xa9   :  { %v542_v17 = vpop.eup %541 }
  0xaa   :  { %v173_v19 = vmul.f32 %v542_v17, %v171_v16  ;;  %vm178_vm2 = vweird.f32 %v542_v17  ;;  %v544_v28 = vpop.eup %543 }
  0xab   :  { %vm179_vm5 = vmor %vm177_vm3, %vm178_vm2 }
  0xac   :  { %v174_v20 = vsub.f32 1.0, %v173_v19 }
  0xae   :  { %v175_v23 = vmul.f32 %v542_v17, %v174_v20 }
  0xb0   :  { %v176_v25 = vadd.f32 %v542_v17, %v175_v23 }
  0xb2   :  { %v180_v27 = vsel %vm179_vm5, %v542_v17, %v176_v25  ;;  %vm508_vm5 = vcmask 1024  }
  0xb3   :  { %v185_v29 = vsel %vm182_vm6, %v184_v26, %v180_v27 }
  0xb4   :  { %v187_v30 = vsel %vm140_vm4, %v544_v28, %v185_v29 }
  0xb5   :  { %190 = vrot.lane.b32.xlu0 %v187_v30, %s655_s2  ;;  %v188_v33 = vmul.f32 0.0, %v187_v30 }
 0x127   :  { %v191_v31 = vpop.permute.xlu0 %190 }
 0x128   :  { %v193_v32 = vmul.f32 %v191_v31, %v187_v30 }
 0x12a   :  { %195 = vrot.lane.b32.xlu0 %v193_v32, %s655_s2 }
 0x19c   :  { %v196_v34 = vpop.permute.xlu0 %195 }
 0x19d   :  { %v759_v35 = vadd.f32 %v196_v34, %v188_v33 }
 0x19f   :  { %545 = vtanh.f32 %v759_v35 }
 0x1a5   :  { %v546_v36 = vpop.eup %545 }
 0x1a6   :  { %201 = vrot.lane.b32.xlu1 %v546_v36, %s655_s2 }
 0x218   :  { %v202_v46 = vpop.permute.xlu1 %201 }
 0x219   :  { %v204_v47 = vmul.f32 %v202_v46, %v187_v30 }
 0x21b   :  { %226 = vrot.lane.b32.xlu1 %v204_v47, %s656_s0 }
 0x28d   :  { %v227_v48 = vpop.permute.xlu1 %226 }
 0x28e   :  { %520 = vmatmul.msk.f32.vlgmr.msra.gmra.mxu3 %vm142_vm7, %v227_v48  ;;  %522 = vmatmul.msk.f32.vlgmr.msrb.gmra.mxu1 %vm142_vm7, %v227_v48 }
 0x30b   :  { %v307_v51 = vpop.f32.mrf.mxu1 }
 0x30c   :  { %v310_v52 = vadd.f32 %v307_v51, %v121_v50 }
 0x30e   :  { %v523_v53 = vmul.f32 -1.442695, %v310_v52 }
 0x310   :  { %547 = vpow2.f32 %v523_v53 }
 0x311   :  { %v247_v56 = vpop.f32.mrf.mxu3 }
 0x312   :  { %v248_v57 = vadd.f32 %v247_v56, %v222_v54 }
 0x314   :  { %v250_v58 = vadd.f32 %v248_v57, %v137_v55 }
 0x316   :  { %v548_v59 = vpop.eup %547  ;;  %v521_v60 = vmul.f32 -1.442695, %v250_v58 }
 0x317   :  { %v315_v61 = vadd.f32 1.0, %v548_v59 }
 0x318   :  { %549 = vpow2.f32 %v521_v60 }
 0x319   :  { %551 = vrcp.f32 %v315_v61  ;;  %v327_v17 = vand.u32 2147483648, %v315_v61  ;;  %vm321_vm13 = vweird.f32 %v315_v61  ;;  %v325_v19 = vand.u32 2147483647, %v315_v61 }
 0x31b   :  { %v328_v22 = vor.u32 1.1754944e-38, %v327_v17  ;;  %vm326_vm15 = vcmp.eq.f32.partialorder %v325_v19, 8.507059e+37 }
 0x31e   :  { %v550_v62 = vpop.eup %549 }
 0x31f   :  { %v255_v63 = vadd.f32 1.0, %v550_v62  ;;  %v552_v0 = vpop.eup %551 }
 0x320   :  { %v317_v1 = vmul.f32 %v552_v0, %v315_v61  ;;  %vm322_vm12 = vweird.f32 %v552_v0 }
 0x321   :  { %553 = vrcp.f32 %v255_v63  ;;  %v267_v6 = vand.u32 2147483648, %v255_v63  ;;  %v265_v9 = vand.u32 2147483647, %v255_v63  ;;  %vm261_vm9 = vweird.f32 %v255_v63  ;;  %vm323_vm14 = vmor %vm321_vm13, %vm322_vm12 }
 0x322   :  { %v318_v4 = vsub.f32 1.0, %v317_v1  ;;  %555 = vtanh.f32 %v250_v58 }
 0x323   :  { %v268_v12 = vor.u32 1.1754944e-38, %v267_v6  ;;  %vm266_vm11 = vcmp.eq.f32.partialorder %v265_v9, 8.507059e+37  ;;  %557 = vtanh.f32 %v310_v52  ;;  %v445_v9 = vld [vmem:[#allocation9] sm:$0xff] }
 0x324   :  { %v319_v10 = vmul.f32 %v552_v0, %v318_v4  ;;  %v448_v4 = vld [vmem:[#allocation9 + $0x18] sm:$0xff] }
 0x325   :  { %468 = vmatpush.msrb.mxu0 %v448_v4 }
 0x326   :  { %v320_v14 = vadd.f32 %v552_v0, %v319_v10 }
 0x327   :  { %v554_v2 = vpop.eup %553 }
 0x328   :  { %v257_v3 = vmul.f32 %v554_v2, %v255_v63  ;;  %vm262_vm8 = vweird.f32 %v554_v2  ;;  %v556_v15 = vpop.eup %555  ;;  %v324_v20 = vsel %vm323_vm14, %v552_v0, %v320_v14  ;;  %v478_v14 = vld [vmem:[%s827_s8 + $0x8] sm:$0xff] }
 0x329   :  { %vm263_vm10 = vmor %vm261_vm9, %vm262_vm8  ;;  %v329_v23 = vsel %vm326_vm15, %v328_v22, %v324_v20  ;;  %v558_v24 = vpop.eup %557  ;;  %v538_v20 = vld [vmem:[#allocation4] ss:$0 sm:$0xff] }
 0x32a   :  { %v258_v5 = vsub.f32 1.0, %v257_v3  ;;  %v331_v25 = vsel %vm140_vm4, %v558_v24, %v329_v23 }
 0x32b   :  { %v332_v33 = vmul.f32 %v331_v25, %v759_v35 }
 0x32c   :  { %v259_v7 = vmul.f32 %v554_v2, %v258_v5  ;;  %v447_v5 = vld [vmem:[#allocation9 + $0x10] sm:$0xff] }
 0x32d   :  { %469 = vmatpush.msrb.mxu0 %v447_v5 }
 0x32e   :  { %v260_v11 = vadd.f32 %v554_v2, %v259_v7  ;;  %v446_v7 = vld [vmem:[#allocation9 + $0x8] sm:$0xff] }
 0x32f   :  { %470 = vmatpush.msrb.mxu0 %v446_v7 }
 0x330   :  { %v264_v13 = vsel %vm263_vm10, %v554_v2, %v260_v11 }
 0x331   :  { %v269_v16 = vsel %vm266_vm11, %v268_v12, %v264_v13  ;;  %471 = vmatpush.msrb.mxu0 %v445_v9  ;;  %v480_v12 = vld [vmem:[%s827_s8 + $0x18] sm:$0xff]  ;;  %v479_v13 = vld [vmem:[%s827_s8 + $0x10] sm:$0xff] }
 0x332   :  { %v271_v18 = vsel %vm140_vm4, %v556_v15, %v269_v16  ;;  %500 = vmatpush.msra.mxu1 %v480_v12  ;;  %v477_v15 = vld [vmem:[%s827_s8] sm:$0xff] }
 0x333   :  { %274 = vrot.lane.b32.xlu2 %v271_v18, %s655_s2  ;;  %v272_v30 = vmul.f32 0.0, %v271_v18  ;;  %v537_v16 = vld [vmem:[%s826_s7] ss:$0 sm:$0xff] }
 0x334   :  { %501 = vmatpush.msra.mxu1 %v479_v13 }
 0x336   :  { %502 = vmatpush.msra.mxu1 %v478_v14 }
 0x338   :  { %503 = vmatpush.msra.mxu1 %v477_v15 }
 0x33b   :  { %334 = vrot.lane.b32.xlu2 %v331_v25, %s655_s2 }
 0x38d   :  { %v275_v26 = vpop.permute.xlu2 %274 }
 0x38e   :  { %v277_v27 = vmul.f32 %v275_v26, %v271_v18 }
 0x390   :  { %279 = vrot.lane.b32.xlu0 %v277_v27, %s655_s2 }
 0x395   :  { %v335_v28 = vpop.permute.xlu2 %334 }
 0x396   :  { %v337_v29 = vmul.f32 %v335_v28, %v331_v25 }
 0x398   :  { %339 = vrot.lane.b32.xlu1 %v337_v29, %s655_s2 }
 0x402   :  { %v280_v31 = vpop.permute.xlu0 %279 }
 0x403   :  { %v282_v32 = vadd.f32 %v280_v31, %v272_v30 }
 0x405   :  { %559 = vtanh.f32 %v282_v32 }
 0x40a   :  { %v340_v34 = vpop.permute.xlu1 %339 }
 0x40b   :  { %v560_v36 = vpop.eup %559  ;;  %v342_v37 = vadd.f32 %v340_v34, %v332_v33 }
 0x40c   :  { %285 = vrot.lane.b32.xlu2 %v560_v36, %s655_s2 }
 0x40d   :  { %561 = vtanh.f32 %v342_v37 }
 0x413   :  { %v562_v38 = vpop.eup %561 }
 0x414   :  { %345 = vrot.lane.b32.xlu0 %v562_v38, %s655_s2 }
 0x466   :  { %v286_v39 = vpop.permute.xlu2 %285 }
 0x467   :  { %v288_v40 = vmul.f32 %v286_v39, %v271_v18 }
 0x469   :  { %350 = vrot.lane.b32.xlu1 %v288_v40, %s656_s0 }
 0x486   :  { %v346_v41 = vpop.permute.xlu0 %345 }
 0x487   :  { %v348_v42 = vmul.f32 %v346_v41, %v331_v25 }
 0x489   :  { %375 = vrot.lane.b32.xlu2 %v348_v42, %s656_s0 }
 0x4db   :  { %v351_v43 = vpop.permute.xlu1 %350 }
 0x4dc   :  { %524 = vmatmul.msk.f32.vlgmr.msrb.gmra.mxu2 %vm142_vm7, %v351_v43 }
 0x4e3   :  { %v376_v35 = vpop.permute.xlu2 %375 }
 0x4e4   :  { %525 = vmatmul.msk.f32.vlgmr.msrb.gmra.mxu3 %vm142_vm7, %v376_v35 }
 0x55f   :  { %v371_v44 = vpop.f32.mrf.mxu2 }
 0x567   :  { %v396_v45 = vpop.f32.mrf.mxu3 }
 0x568   :  { %v397_v46 = vadd.f32 %v396_v45, %v371_v44 }
 0x56a   :  { %v399_v47 = vadd.f32 %v397_v46, %v137_v55 }
 0x56c   :  { %v526_v48 = vmul.f32 -1.442695, %v399_v47 }
 0x56e   :  { %563 = vpow2.f32 %v526_v48 }
 0x574   :  { %v564_v49 = vpop.eup %563 }
 0x575   :  { %v404_v50 = vadd.f32 1.0, %v564_v49 }
 0x577   :  { %565 = vrcp.f32 %v404_v50  ;;  %v416_v54 = vand.u32 2147483648, %v404_v50  ;;  %v414_v57 = vand.u32 2147483647, %v404_v50  ;;  %vm410_vm1 = vweird.f32 %v404_v50 }
 0x578   :  { %567 = vtanh.f32 %v399_v47 }
 0x579   :  { %v417_v59 = vor.u32 1.1754944e-38, %v416_v54  ;;  %vm415_vm3 = vcmp.eq.f32.partialorder %v414_v57, 8.507059e+37 }
 0x57d   :  { %v566_v51 = vpop.eup %565 }
 0x57e   :  { %v406_v52 = vmul.f32 %v566_v51, %v404_v50  ;;  %vm411_vm0 = vweird.f32 %v566_v51  ;;  %v568_v8 = vpop.eup %567 }
 0x57f   :  { %vm412_vm2 = vmor %vm410_vm1, %vm411_vm0 }
 0x580   :  { %v407_v53 = vsub.f32 1.0, %v406_v52 }
 0x582   :  { %v408_v56 = vmul.f32 %v566_v51, %v407_v53 }
 0x584   :  { %v409_v58 = vadd.f32 %v566_v51, %v408_v56 }
 0x586   :  { %v413_v60 = vsel %vm412_vm2, %v566_v51, %v409_v58 }
 0x587   :  { %v418_v55 = vsel %vm415_vm3, %v417_v59, %v413_v60 }
 0x588   :  { %v420_v61 = vsel %vm140_vm4, %v568_v8, %v418_v55  ;;  %vm442_vm4 = vcmask 261126  }
 0x589   :  { %423 = vrot.lane.b32.xlu0 %v420_v61, %s655_s2  ;;  %v421_v0 = vmul.f32 %v420_v61, %v282_v32 }
 0x5fb   :  { %v424_v62 = vpop.permute.xlu0 %423 }
 0x5fc   :  { %v426_v63 = vmul.f32 %v424_v62, %v420_v61 }
 0x5fe   :  { %428 = vrot.lane.b32.xlu1 %v426_v63, %s655_s2 }
 0x670   :  { %v429_v1 = vpop.permute.xlu1 %428 }
 0x671   :  { %v431_v2 = vadd.f32 %v429_v1, %v421_v0 }
 0x673   :  { %569 = vtanh.f32 %v431_v2 }
 0x679   :  { %v570_v3 = vpop.eup %569 }
 0x67a   :  { %434 = vrot.lane.b32.xlu2 %v570_v3, %s655_s2 }
 0x6d4   :  { %v435_v6 = vpop.permute.xlu2 %434 }
 0x6d5   :  { %v437_v21 = vmul.f32 %v435_v6, %v420_v61 }
 0x6d7   :  { %439 = vrot.lane.b32.xlu0 %v437_v21, %s656_s0 }
 0x749   :  { %v440_v10 = vpop.permute.xlu0 %439 }
 0x74a   :  { %443 = vst.msk [vmem:[#allocation3 - $0x6] sm:$0xc0] %vm442_vm4, %v440_v10 }
 0x751   :  { %v444_v11 = vld [vmem:[#allocation3] sm:$0x3] }
 0x752   :  { %527 = vmatmul.msk.f32.vlgmr.msrb.gmra.mxu0 %vm142_vm7, %v444_v11 }
 0x7cf   :  { %v473_v17 = vpop.f32.mrf.mxu0 }
 0x7d0   :  { %v474_v18 = vadd.f32 %v537_v16, %v473_v17 }
 0x7d2   :  { %571 = vtanh.f32 %v474_v18 }
 0x7d8   :  { %v572_v19 = vpop.eup %571 }
 0x7d9   :  { %528 = vmatmul.msk.f32.vlgmr.msra.gmra.mxu1 %vm142_vm7, %v572_v19 }
 0x856   :  { %v505_v22 = vpop.f32.mrf.mxu1 }
 0x857   :  { %v506_v23 = vadd.f32 %v538_v20, %v505_v22 }
 0x859   :  { %509 = vst.msk [vmem:[%s829_s10] sm:$0x3] %vm508_vm5, %v506_v23 }
 0x85a   :  { %514 = vsyncpa [#allocation6], 1 }
 0x85b   :  { %515 = vsyncpa [#allocation8], 1 }

</bundles_post_ra>
